<compile_context>
chip_gen: v5e
topology: v5e:2x2
jax: 0.10.0
libtpu: 0.0.40
codegen_flags: <defaults>
</compile_context>

<pallas_src>
import functools
import math

import jax
import jax.numpy as jnp
from jax import lax
from jax.experimental import pallas as pl
from jax.experimental.pallas import tpu as pltpu


_MASK_VALUE = -1e30  # finite "-inf" for masked (padded) key columns


# --------------------------------------------------------------------------
# Kernel bodies
# --------------------------------------------------------------------------
def _attention_compute(q_ref, k_ref, v_ref, *, scale, kv_len, kv_padded,
                       compute_dtype):
    # Block shapes: q (BB, TQ, D), k (BB, Tk_p, D), v (BB, Tk_p, Dv_p)
    q = q_ref[...]
    k = k_ref[...]
    v = v_ref[...]
    if compute_dtype is not None:
        q = q.astype(compute_dtype)
        k = k.astype(compute_dtype)
        v = v.astype(compute_dtype)

    # scores[b, q, k] = sum_d q[b, q, d] * k[b, k, d]
    # (batched contraction on D; MXU takes the transposed operand directly,
    #  no XLU relayout / materialized k.T)
    scores = lax.dot_general(
        q, k,
        dimension_numbers=(((2,), (2,)), ((0,), (0,))),
        preferred_element_type=jnp.float32,
    )  # (BB, TQ, Tk_p), f32

    # Scale AFTER the matmul, in f32 — exact PyTorch order (attn / sqrt(d)).
    scores = scores * jnp.float32(scale)

    if kv_padded:
        # Mask the zero-padded key columns so softmax normalization is exact.
        col = lax.broadcasted_iota(jnp.int32, scores.shape, dimension=2)
        scores = jnp.where(col < kv_len, scores, _MASK_VALUE)

    # Numerically stable softmax over the key axis.
    m = jnp.max(scores, axis=-1, keepdims=True)
    e = jnp.exp(scores - m)
    denom = jnp.sum(e, axis=-1, keepdims=True)
    # Exact reciprocal: attn is externally visible and must row-sum to 1.
    attn = e * pl.reciprocal(denom)

    # TODO(synk): nn.Dropout(p=0.1) is training-only; this kernel implements
    # eval-mode semantics (identity). Training parity would need
    # pltpu.prng_seed + pltpu.prng_random_bits masking.

    # result[b, q, dv] = sum_k attn[b, q, k] * v[b, k, dv]
    result = lax.dot_general(
        attn.astype(v.dtype), v,
        dimension_numbers=(((2,), (1,)), ((0,), (0,))),
        preferred_element_type=jnp.float32,
    )  # (BB, TQ, Dv_p), f32
    return result, attn


def _attn_kernel(q_ref, k_ref, v_ref, out_ref, attn_ref, *, scale, kv_len,
                 kv_padded, compute_dtype):
    result, attn = _attention_compute(
        q_ref, k_ref, v_ref, scale=scale, kv_len=kv_len, kv_padded=kv_padded,
        compute_dtype=compute_dtype)
    out_ref[...] = result.astype(out_ref.dtype)
    attn_ref[...] = attn.astype(attn_ref.dtype)


def _attn_kernel_no_probs(q_ref, k_ref, v_ref, out_ref, *, scale, kv_len,
                          kv_padded, compute_dtype):
    result, _ = _attention_compute(
        q_ref, k_ref, v_ref, scale=scale, kv_len=kv_len, kv_padded=kv_padded,
        compute_dtype=compute_dtype)
    out_ref[...] = result.astype(out_ref.dtype)


# --------------------------------------------------------------------------
# Tiling / VMEM model
# --------------------------------------------------------------------------
def _round_up(x, m):
    return ((x + m - 1) // m) * m


def _vmem_budgets():
    """Generation-aware (per-step block-bytes budget, vmem_limit_bytes)."""
    cap = None
    try:
        cap = int(pltpu.get_tpu_info().vmem_capacity_bytes)
    except Exception:  # pragma: no cover - not on TPU / API unavailable
        cap = None
    if cap is not None and cap <= 80 * 1024 * 1024:
        # v7x-class: 64 MiB VMEM per TensorCore — leave headroom for Mosaic
        # internal scratch.
        return 8 * 1024 * 1024, 36 * 1024 * 1024
    # v5e / v6e: 128 MiB VMEM.
    return 12 * 1024 * 1024, 48 * 1024 * 1024


def _step_bytes(bb, tq, tk_p, d, dv_p, in_isz, out_isz, with_attn):
    """Honest per-grid-step VMEM estimate."""
    # Input blocks: Pallas double-buffers q / k / v.
    in_blocks = 2 * bb * (tq * d + tk_p * d + tk_p * dv_p) * in_isz
    # Output blocks: double-buffered result (+ attn).
    out_elems = tq * dv_p + (tq * tk_p if with_attn else 0)
    out_blocks = 2 * bb * out_elems * out_isz
    # f32 in-kernel intermediates: scores / exp / attn (~3x) plus f32 result.
    interm = bb * tq * (3 * tk_p + dv_p) * 4
    return in_blocks + out_blocks + interm


def _choose_tiling(B, Tq, tk_p, d, dv_p, in_isz, out_isz, budget, with_attn):
    """Joint (batch-block, Tq-tile) search maximizing per-step block volume."""
    tq8 = _round_up(max(Tq, 1), 8)
    cands = {t for t in (1024, 512, 256, 128, 64, 32, 16, 8) if t <= tq8}
    cands.add(tq8 if tq8 <= 1024 else 1024)
    cands = sorted(cands, reverse=True)
    divisors = [dd for dd in range(B, 0, -1) if B % dd == 0]

    best = None
    for tq in cands:
        for bb in divisors:
            if _step_bytes(bb, tq, tk_p, d, dv_p, in_isz, out_isz,
                           with_attn) <= budget:
                score = (bb * tq, tq)
                if best is None or score > best[0]:
                    best = (score, (bb, tq))
                break  # largest feasible bb for this tq found
    if best is None:
        # TODO(synk): for very long Tk add a Tk grid axis ("arbitrary") with an
        # online-softmax accumulator; here we fall back to the smallest tile.
        return 1, 8
    return best[1]


# --------------------------------------------------------------------------
# Public wrapper
# --------------------------------------------------------------------------
def multihead_attention(key, value, query, num_hidden_k, *, return_attn=True,
                        use_bf16_matmul=False):
    """Pallas equivalent of MultiheadAttention.forward (eval mode).

    key:   (B, Tk, D)
    value: (B, Tk, Dv)
    query: (B, Tq, D)
    returns (result (B, Tq, Dv), attn (B, Tq, Tk))   [or just result]
    """
    B, Tk, D = key.shape
    _, _, Dv = value.shape
    _, Tq, _ = query.shape
    scale = 1.0 / math.sqrt(num_hidden_k)

    # --- lane-dense output layout (pad, slice after the call) --------------
    tk_p = _round_up(Tk, 128)   # attn last dim
    dv_p = _round_up(Dv, 128)   # result last dim

    # --- tiling -------------------------------------------------------------
    budget, vmem_limit = _vmem_budgets()
    in_isz = jnp.dtype(query.dtype).itemsize
    out_isz = jnp.dtype(query.dtype).itemsize
    bb, tq_tile = _choose_tiling(B, Tq, tk_p, D, dv_p, in_isz, out_isz,
                                 budget, return_attn)

    tq_p = _round_up(Tq, tq_tile)
    grid_b, grid_q = B // bb, tq_p // tq_tile
    if grid_b == 1 and B >= 2:
        # >=2 programs on the (parallel) batch axis: both v7x TensorCores run
        # and stream disjoint K/V blocks instead of duplicating K/V reads.
        bb = max(dd for dd in range(1, B // 2 + 1) if B % dd == 0)
    elif grid_b * grid_q < 2 and tq_tile > 8:
        tq_tile = max(8, tq_tile // 2)
        tq_p = _round_up(Tq, tq_tile)

    grid = (B // bb, tq_p // tq_tile)

    # --- wrapper-side zero padding ------------------------------------------
    qp = query if tq_p == Tq else jnp.pad(query, ((0, 0), (0, tq_p - Tq), (0, 0)))
    kp = key if tk_p == Tk else jnp.pad(key, ((0, 0), (0, tk_p - Tk), (0, 0)))
    if tk_p != Tk or dv_p != Dv:
        vp = jnp.pad(value, ((0, 0), (0, tk_p - Tk), (0, dv_p - Dv)))
    else:
        vp = value

    compute_dtype = (jnp.bfloat16
                     if (use_bf16_matmul and query.dtype == jnp.float32)
                     else None)
    kernel_kw = dict(scale=scale, kv_len=Tk, kv_padded=(tk_p != Tk),
                     compute_dtype=compute_dtype)

    in_specs = [
        pl.BlockSpec((bb, tq_tile, D), lambda b, i: (b, i, 0)),     # query
        pl.BlockSpec((bb, tk_p, D), lambda b, i: (b, 0, 0)),        # key
        pl.BlockSpec((bb, tk_p, dv_p), lambda b, i: (b, 0, 0)),     # value
    ]
    out_spec_res = pl.BlockSpec((bb, tq_tile, dv_p), lambda b, i: (b, i, 0))
    out_spec_att = pl.BlockSpec((bb, tq_tile, tk_p), lambda b, i: (b, i, 0))

    compiler_params = pltpu.CompilerParams(
        dimension_semantics=("parallel", "parallel"),
        vmem_limit_bytes=vmem_limit,
    )

    if return_attn:
        result, attn = pl.pallas_call(
            functools.partial(_attn_kernel, **kernel_kw),
            out_shape=(
                jax.ShapeDtypeStruct((B, tq_p, dv_p), query.dtype),
                jax.ShapeDtypeStruct((B, tq_p, tk_p), query.dtype),
            ),
            grid_spec=pltpu.PrefetchScalarGridSpec(
                num_scalar_prefetch=0,
                grid=grid,
                in_specs=in_specs,
                out_specs=[out_spec_res, out_spec_att],
            ),
            compiler_params=compiler_params,
        )(qp, kp, vp)
        return result[:, :Tq, :Dv], attn[:, :Tq, :Tk]

    result = pl.pallas_call(
        functools.partial(_attn_kernel_no_probs, **kernel_kw),
        out_shape=jax.ShapeDtypeStruct((B, tq_p, dv_p), query.dtype),
        grid_spec=pltpu.PrefetchScalarGridSpec(
            num_scalar_prefetch=0,
            grid=grid,
            in_specs=in_specs,
            out_specs=out_spec_res,
        ),
        compiler_params=compiler_params,
    )(qp, kp, vp)
    return result[:, :Tq, :Dv]


# --------------------------------------------------------------------------
# Reference + self-test
# --------------------------------------------------------------------------
def _reference(key, value, query, num_hidden_k):
    attn = jnp.einsum("bqd,bkd->bqk", query, key) / math.sqrt(num_hidden_k)
    attn = jax.nn.softmax(attn, axis=-1)
    result = jnp.einsum("bqk,bkd->bqd", attn, value)
    return result, attn


if __name__ == "__main__":
    B, Tq, Tk, D = 2, 8, 8, 32   # num_hidden_k = D
    num_hidden_k = D

    k0 = jax.random.PRNGKey(0)
    kk, kv, kq = jax.random.split(k0, 3)
    key = jax.random.normal(kk, (B, Tk, D), dtype=jnp.float32)
    value = jax.random.normal(kv, (B, Tk, D), dtype=jnp.float32)
    query = jax.random.normal(kq, (B, Tq, D), dtype=jnp.float32)

    result, attn = multihead_attention(key, value, query, num_hidden_k)
    jax.block_until_ready((result, attn))

    ref_result, ref_attn = _reference(key, value, query, num_hidden_k)
    assert result.shape == ref_result.shape and attn.shape == ref_attn.shape
    assert jnp.allclose(result, ref_result, atol=1e-4, rtol=1e-4)
    assert jnp.allclose(attn, ref_attn, atol=1e-4, rtol=1e-4)

    # Also exercise the result-only fast path once.
    result_only = multihead_attention(key, value, query, num_hidden_k,
                                      return_attn=False)
    jax.block_until_ready(result_only)
    assert jnp.allclose(result_only, ref_result, atol=1e-4, rtol=1e-4)

    print("KERNEL_OK")
</pallas_src>

<mosaic_0001>
module attributes {stable_mosaic.version = 11 : i64} {
  func.func @_attn_kernel(%arg0: i32, %arg1: i32, %arg2: memref<1x8x32xf32, #tpu.memory_space<vmem>>, %arg3: memref<1x128x32xf32, #tpu.memory_space<vmem>>, %arg4: memref<1x128x128xf32, #tpu.memory_space<vmem>>, %arg5: memref<1x8x128xf32, #tpu.memory_space<vmem>>, %arg6: memref<1x8x128xf32, #tpu.memory_space<vmem>>) attributes {dimension_semantics = [#tpu.dimension_semantics<parallel>, #tpu.dimension_semantics<parallel>], iteration_bounds = array<i64: 2, 1>, scalar_prefetch = 0 : i64, scratch_operands = 0 : i64, tpu.core_type = #tpu.core_type<tc>, window_params = [{transform_indices = @transform_0, window_bounds = array<i64: 1, 8, 32>}, {transform_indices = @transform_1, window_bounds = array<i64: 1, 128, 32>}, {transform_indices = @transform_2, window_bounds = array<i64: 1, 128, 128>}, {transform_indices = @transform_3, window_bounds = array<i64: 1, 8, 128>}, {transform_indices = @transform_4, window_bounds = array<i64: 1, 8, 128>}]} {
    %c0 = arith.constant 0 : index
    %c0_0 = arith.constant 0 : index
    %c0_1 = arith.constant 0 : index
    %0 = vector.load %arg2[%c0, %c0_0, %c0_1] : memref<1x8x32xf32, #tpu.memory_space<vmem>>, vector<1x8x32xf32>
    %c0_2 = arith.constant 0 : index
    %c0_3 = arith.constant 0 : index
    %c0_4 = arith.constant 0 : index
    %1 = vector.load %arg3[%c0_2, %c0_3, %c0_4] : memref<1x128x32xf32, #tpu.memory_space<vmem>>, vector<1x128x32xf32>
    %c0_5 = arith.constant 0 : index
    %c0_6 = arith.constant 0 : index
    %c0_7 = arith.constant 0 : index
    %2 = vector.load %arg4[%c0_5, %c0_6, %c0_7] : memref<1x128x128xf32, #tpu.memory_space<vmem>>, vector<1x128x128xf32>
    %cst = arith.constant dense<0.000000e+00> : vector<1x8x128xf32>
    %3 = tpu.matmul %0, %1, %cst {dimension_numbers = #tpu.dot_dimension_numbers<[2], [2], [1], [1], [0, 0, 0, 1, 1, 1], [0], [0]>} : vector<1x8x32xf32>, vector<1x128x32xf32>, vector<1x8x128xf32> -> vector<1x8x128xf32>
    %cst_8 = arith.constant 0.176776692 : f32
    %4 = vector.broadcast %cst_8 : f32 to vector<1x8x128xf32>
    %5 = arith.mulf %3, %4 : vector<1x8x128xf32>
    %6 = tpu.iota {dimensions = array<i32: 2>} : vector<1x8x128xi32>
    %c8_i32 = arith.constant 8 : i32
    %7 = vector.broadcast %c8_i32 : i32 to vector<1x8x128xi32>
    %8 = arith.cmpi slt, %6, %7 : vector<1x8x128xi32>
    %cst_9 = arith.constant -1.000000e+30 : f32
    %9 = vector.broadcast %cst_9 : f32 to vector<1x8x128xf32>
    %10 = arith.select %8, %5, %9 : vector<1x8x128xi1>, vector<1x8x128xf32>
    %cst_10 = arith.constant dense<0xFF800000> : vector<1x8xf32>
    %11 = vector.multi_reduction <maximumf>, %10, %cst_10 [2] : vector<1x8x128xf32> to vector<1x8xf32>
    %12 = vector.shape_cast %11 : vector<1x8xf32> to vector<1x8x1xf32>
    %13 = vector.broadcast %12 : vector<1x8x1xf32> to vector<1x8x128xf32>
    %14 = arith.subf %10, %13 : vector<1x8x128xf32>
    %15 = math.exp %14 : vector<1x8x128xf32>
    %cst_11 = arith.constant dense<0.000000e+00> : vector<1x8xf32>
    %16 = vector.multi_reduction <add>, %15, %cst_11 [2] : vector<1x8x128xf32> to vector<1x8xf32>
    %17 = vector.shape_cast %16 : vector<1x8xf32> to vector<1x8x1xf32>
    %18 = tpu.reciprocal %17 : vector<1x8x1xf32> -> vector<1x8x1xf32>
    %19 = vector.broadcast %18 : vector<1x8x1xf32> to vector<1x8x128xf32>
    %20 = arith.mulf %15, %19 : vector<1x8x128xf32>
    %cst_12 = arith.constant dense<0.000000e+00> : vector<1x8x128xf32>
    %21 = tpu.matmul %20, %2, %cst_12 {dimension_numbers = #tpu.dot_dimension_numbers<[2], [1], [1], [2], [0, 0, 0, 1, 1, 2], [0], [0]>} : vector<1x8x128xf32>, vector<1x128x128xf32>, vector<1x8x128xf32> -> vector<1x8x128xf32>
    %c0_13 = arith.constant 0 : index
    %c0_14 = arith.constant 0 : index
    %c0_15 = arith.constant 0 : index
    %22 = vector.load %arg5[%c0_13, %c0_14, %c0_15] : memref<1x8x128xf32, #tpu.memory_space<vmem>>, vector<1x8x128xf32>
    tpu.vector_store %arg5[%c0_13, %c0_14, %c0_15], %21 {strides = array<i32>} : memref<1x8x128xf32, #tpu.memory_space<vmem>>, vector<1x8x128xf32>,
    %c0_16 = arith.constant 0 : index
    %c0_17 = arith.constant 0 : index
    %c0_18 = arith.constant 0 : index
    %23 = vector.load %arg6[%c0_16, %c0_17, %c0_18] : memref<1x8x128xf32, #tpu.memory_space<vmem>>, vector<1x8x128xf32>
    tpu.vector_store %arg6[%c0_16, %c0_17, %c0_18], %20 {strides = array<i32>} : memref<1x8x128xf32, #tpu.memory_space<vmem>>, vector<1x8x128xf32>,
    return
  }
  func.func @transform_0(%arg0: i32, %arg1: i32) -> (i32, i32, i32) {
    %c0_i32 = arith.constant 0 : i32
    %c0_i32_0 = arith.constant 0 : i32
    return %arg0, %arg1, %c0_i32 : i32, i32, i32
  }
  func.func @transform_1(%arg0: i32, %arg1: i32) -> (i32, i32, i32) {
    %c0_i32 = arith.constant 0 : i32
    %c0_i32_0 = arith.constant 0 : i32
    %c0_i32_1 = arith.constant 0 : i32
    return %arg0, %c0_i32, %c0_i32_0 : i32, i32, i32
  }
  func.func @transform_2(%arg0: i32, %arg1: i32) -> (i32, i32, i32) {
    %c0_i32 = arith.constant 0 : i32
    %c0_i32_0 = arith.constant 0 : i32
    %c0_i32_1 = arith.constant 0 : i32
    return %arg0, %c0_i32, %c0_i32_0 : i32, i32, i32
  }
  func.func @transform_3(%arg0: i32, %arg1: i32) -> (i32, i32, i32) {
    %c0_i32 = arith.constant 0 : i32
    %c0_i32_0 = arith.constant 0 : i32
    return %arg0, %arg1, %c0_i32 : i32, i32, i32
  }
  func.func @transform_4(%arg0: i32, %arg1: i32) -> (i32, i32, i32) {
    %c0_i32 = arith.constant 0 : i32
    %c0_i32_0 = arith.constant 0 : i32
    return %arg0, %arg1, %c0_i32 : i32, i32, i32
  }
}

</mosaic_0001>

<bundles_post_ra>
// kernel: tpu_custom_call.1
= control target key start
LH: loop header
LB: loop body
LE: loop exit
PB: predicated region body
PF: predicated region fallthrough
CT: control target
= control target key end

     0   :  { %10 = vsyncpa [#allocation3], 0  ;;  %s1015_s0 = inlined_call_operand.vmem [shape: f32[2,8,32], index: 0, kind: input, shape index: {}]   ;;  %s1016_s1 = inlined_call_operand.vmem [shape: f32[2,128,32], index: 1, kind: input, shape index: {}]   ;;  %s1017_s2 = inlined_call_operand.vmem [shape: f32[2,128,128], index: 2, kind: input, shape index: {}]   ;;  %s1018_s3 = inlined_call_operand.hbm [shape: f32[2,8,128], index: 3, kind: output, shape index: {0}]   ;;  %s1019_s4 = inlined_call_operand.hbm [shape: f32[2,8,128], index: 4, kind: output, shape index: {1}]  }
   0x1   :  { %12 = vsyncpa [#allocation3 + $0x1], 0 }
   0x2   :  { %13 = vsyncpa [#allocation5], 0 }
   0x3   :  { %15 = vsyncpa [#allocation5 + $0x1], 0  ;;  %s829_s15 = smov 0   ;;  %s831_s16 = smov 0  }
   0x4   :  { %s833_s17 = smov 0   ;;  %s835_s18 = smov 0  }
   0x5   :  { %s837_s19 = smov 0   ;;  %s839_s20 = smov 0  }
   0x6 LB: > { %s591_s21 = sadd.s32 4294967295, %s802_s20   ;;  %s592_s22 = sadd.s32 4294967294, %s802_s20   ;;  %s802_s20 = sphi %s839_s20, %s21_s20   ;;  %s798_s19 = sphi %s837_s19, %s1026_s19   ;;  %s794_s18 = sphi %s835_s18, %s1025_s18   ;;  %s790_s17 = sphi %s833_s17, %s1024_s17   ;;  %s786_s16 = sphi %s831_s16, %s1023_s16   ;;  %s782_s15 = sphi %s829_s15, %s1022_s15  }
   0x7   : > { %s33_s23 = sadd.s32 1, %s798_s19  ;;  %s122_s24 = sadd.s32 1, %s790_s17 }
   0x8   : > { %p35_p0 = scmp.ge.s32.totalorder %s33_s23, 2  ;;  %p132_p1 = scmp.ne.s32.totalorder %s790_s17, %s786_s16 }
   0x9   : > { %p133_p2 = scmp.eq.s32.totalorder %s591_s21, 1  ;;  %p138_p3 = scmp.ne.s32.totalorder %s786_s16, %s782_s15 }
   0xa   : > { %s1028_s23 = smov (%p35_p0, %s33_s23), 0  ;;  %p139_p5 = scmp.eq.s32.totalorder %s592_s22, 1 }
   0xb   : > { %p869_p4 = por %p133_p2, %p132_p1  ;;  %s117_s26 = ssub.s32 %s798_s19, %s1028_s23 }
   0xc   : > { %p595_p6 = scmp.ge.s32.totalorder %s802_s20, 1  ;;  %p120_p7 = scmp.eq.s32.totalorder %s117_s26, 0 }
   0xd   : > { %p876_p8 = por %p139_p5, %p138_p3  ;;  %p211_p9 = scmp.lt.s32.totalorder %s802_s20, 3 }
   0xe   : > { %s882_s28 = scalar_select %p120_p7, %s790_s17, %s122_s24  }
   0xf   : > { %p212_p10 = pnand %p595_p6, %p211_p9 }
  0x10   : > { %p254_p11 = scmp.lt.s32.totalorder (!%p212_p10), %s794_s18, 1  ;;  %s957_s21 = sand.u32 (!%p212_p10), 1, %s786_s16  }
  0x11   : > { %215 = sbr.rel (%p212_p10) target bundleno = 610 (0x262), region = 32  ;;  %s596_s22 = sshll.u32 (!%p212_p10), %s957_s21, 3 }
  0x12   : > { %s622_s24 = sshll.u32 (!%p212_p10), %s794_s18, 3  ;;  %s253_s5 = scalar_lea.vmem (!%p212_p10), [#allocation4], %s596_s22 }
  0x13   : > { %s459_s6 = sshll.u32 (!%p212_p10), %s253_s5, 4  ;;  %s712_s12 = scalar_lea.hbm (!%p212_p10), %s1019_s4, 16  ;;  %s460_s6 = int_to_ptr.vmem [resolvable:$true] %s459_s6 }
  0x16   : > { %s886_s29 = scalar_select %p254_p11, %s794_s18, 1  ;;  %vm304_vm0 = vcmask 261120   ;;  %v377_v17 = vlaneseq }
  0x18   : > { %s626_s30 = sshll.u32 %s886_s29, 7  ;;  %s598_s8 = sshll.u32 %s886_s29, 3  ;;  %v378_v18 = vand.u32 127, %v377_v17 }
  0x19   : > { %s894_s7 = scalar_lea.vmem %s1016_s1, %s626_s30  ;;  %s260_s11 = scalar_lea.vmem %s1015_s0, %s598_s8 }
  0x1a   : > { %v287_v0 = vld [vmem:[%s894_s7 + $0x78] sm:$0xff]  ;;  %v286_v1 = vld [vmem:[%s894_s7 + $0x70] sm:$0xff]  ;;  %v285_v2 = vld [vmem:[%s894_s7 + $0x68] sm:$0xff]  ;;  %vm379_vm1 = vcmp.lt.s32.totalorder %v378_v18, 8  ;;  %s938_s14 = scalar_lea.vmem %s1017_s2, %s626_s30  ;;  %s457_s30 = scalar_lea.hbm %s1019_s4, %s622_s24 }
  0x1b   : > { %603 = vmatpush.xpose.msk.msra.mxu0 %vm304_vm0, %v287_v0  ;;  %v284_v3 = vld [vmem:[%s894_s7 + $0x60] sm:$0xff]  ;;  %v283_v4 = vld [vmem:[%s894_s7 + $0x58] sm:$0xff]  ;;  %v282_v5 = vld [vmem:[%s894_s7 + $0x50] sm:$0xff]  ;;  %s431_s8 = scalar_lea.sflag [#allocation5], %s957_s21 }
  0x1c   : > { %v281_v6 = vld [vmem:[%s894_s7 + $0x48] sm:$0xff]  ;;  %v280_v7 = vld [vmem:[%s894_s7 + $0x40] sm:$0xff]  ;;  %v279_v8 = vld [vmem:[%s894_s7 + $0x38] sm:$0xff] }
  0x1d   : > { %v278_v9 = vld [vmem:[%s894_s7 + $0x30] sm:$0xff]  ;;  %v277_v10 = vld [vmem:[%s894_s7 + $0x28] sm:$0xff]  ;;  %v276_v11 = vld [vmem:[%s894_s7 + $0x20] sm:$0xff] }
  0x1e   : > { %v275_v12 = vld [vmem:[%s894_s7 + $0x18] sm:$0xff]  ;;  %v274_v13 = vld [vmem:[%s894_s7 + $0x10] sm:$0xff]  ;;  %v273_v14 = vld [vmem:[%s894_s7 + $0x8] sm:$0xff] }
  0x1f   : > { %604 = vmatpush.xpose.msk.msra.mxu0 %vm304_vm0, %v286_v1  ;;  %v272_v15 = vld [vmem:[%s894_s7] sm:$0xff]  ;;  %v303_v22 = vld [vmem:[%s938_s14 + $0x78] sm:$0xff]  ;;  %v302_v23 = vld [vmem:[%s938_s14 + $0x70] sm:$0xff]  ;;  %s461_s7 = sshll.u32 %s457_s30, 4  ;;  %s462_s7 = int_to_ptr.hbm [resolvable:$true] %s461_s7 }
  0x20   : > { %v271_v16 = vld [vmem:[%s260_s11] sm:$0xff]  ;;  %403 = vmatpush.msra.mxu1 %v303_v22  ;;  %v301_v24 = vld [vmem:[%s938_s14 + $0x68] sm:$0xff]  ;;  %v299_v26 = vld [vmem:[%s938_s14 + $0x58] sm:$0xff]  ;;  %s706_s9 = sshra.s32 %s462_s7, 4  ;;  %s707_s9 = int_to_ptr.hbm [resolvable:$true] %s706_s9 }
  0x21   : > { %v300_v25 = vld [vmem:[%s938_s14 + $0x60] sm:$0xff]  ;;  %v298_v27 = vld [vmem:[%s938_s14 + $0x50] sm:$0xff]  ;;  %v297_v32 = vld [vmem:[%s938_s14 + $0x48] sm:$0xff]  ;;  %s708_s18 = scalar_lea.hbm %s707_s9, 8  ;;  %p713_p1 = scmp.lt.s32.totalorder %s707_s9, %s1019_s4 }
  0x22   : > { %404 = vmatpush.msra.mxu1 %v302_v23  ;;  %v296_v33 = vld [vmem:[%s938_s14 + $0x40] sm:$0xff]  ;;  %v295_v34 = vld [vmem:[%s938_s14 + $0x38] sm:$0xff]  ;;  %v294_v35 = vld [vmem:[%s938_s14 + $0x30] sm:$0xff]  ;;  %p709_p12 = scmp.ne.s32.totalorder %s707_s9, %s708_s18  ;;  %p714_p2 = scmp.lt.s32.totalorder %s712_s12, %s708_s18 }
  0x23   : > { %605 = vmatpush.xpose.msk.msra.mxu0 %vm304_vm0, %v285_v2  ;;  %v293_v36 = vld [vmem:[%s938_s14 + $0x28] sm:$0xff]  ;;  %v292_v37 = vld [vmem:[%s938_s14 + $0x20] sm:$0xff]  ;;  %v291_v38 = vld [vmem:[%s938_s14 + $0x18] sm:$0xff] }
  0x24   : > { %405 = vmatpush.msra.mxu1 %v301_v24  ;;  %v290_v39 = vld [vmem:[%s938_s14 + $0x10] sm:$0xff]  ;;  %v289_v40 = vld [vmem:[%s938_s14 + $0x8] sm:$0xff]  ;;  %v288_v41 = vld [vmem:[%s938_s14] sm:$0xff]  ;;  %p710_p13 = pnand %p709_p12, %p869_p4  ;;  %p715_p3 = por %p714_p2, %p713_p1 }
  0x26   : > { %406 = vmatpush.msra.mxu1 %v300_v25  ;;  %p711_p0 = pneg %p710_p13 }
  0x27   : > { %606 = vmatpush.xpose.msk.msra.mxu0 %vm304_vm0, %v284_v3 }
  0x28   : > { %407 = vmatpush.msra.mxu1 %v299_v26  ;;  %p716_p5 = pnand %p715_p3, %p711_p0 }
  0x2a   : > { %408 = vmatpush.msra.mxu1 %v298_v27 }
  0x2b   : > { %607 = vmatpush.xpose.msk.msra.mxu0 %vm304_vm0, %v283_v4 }
  0x2c   : > { %409 = vmatpush.msra.mxu1 %v297_v32 }
  0x2e   : > { %410 = vmatpush.msra.mxu1 %v296_v33 }
  0x2f   : > { %608 = vmatpush.xpose.msk.msra.mxu0 %vm304_vm0, %v282_v5 }
  0x30   : > { %411 = vmatpush.msra.mxu1 %v295_v34 }
  0x32   : > { %412 = vmatpush.msra.mxu1 %v294_v35 }
  0x33   : > { %609 = vmatpush.xpose.msk.msra.mxu0 %vm304_vm0, %v281_v6 }
  0x34   : > { %413 = vmatpush.msra.mxu1 %v293_v36 }
  0x36   : > { %414 = vmatpush.msra.mxu1 %v292_v37 }
  0x37   : > { %610 = vmatpush.xpose.msk.msra.mxu0 %vm304_vm0, %v280_v7 }
  0x38   : > { %415 = vmatpush.msra.mxu1 %v291_v38 }
  0x3a   : > { %416 = vmatpush.msra.mxu1 %v290_v39 }
  0x3b   : > { %611 = vmatpush.xpose.msk.msra.mxu0 %vm304_vm0, %v279_v8 }
  0x3c   : > { %417 = vmatpush.msra.mxu1 %v289_v40 }
  0x3e   : > { %418 = vmatpush.msra.mxu1 %v288_v41 }
  0x3f   : > { %612 = vmatpush.xpose.msk.msra.mxu0 %vm304_vm0, %v278_v9 }
  0x43   : > { %613 = vmatpush.xpose.msk.msra.mxu0 %vm304_vm0, %v277_v10 }
  0x47   : > { %614 = vmatpush.xpose.msk.msra.mxu0 %vm304_vm0, %v276_v11 }
  0x4b   : > { %615 = vmatpush.xpose.msk.msra.mxu0 %vm304_vm0, %v275_v12 }
  0x4f   : > { %616 = vmatpush.xpose.msk.msra.mxu0 %vm304_vm0, %v274_v13 }
  0x53   : > { %617 = vmatpush.xpose.msk.msra.mxu0 %vm304_vm0, %v273_v14 }
  0x57   : > { %618 = vmatpush.xpose.msk.msra.mxu0 %vm304_vm0, %v272_v15 }
  0x5a   : > { %619 = vmatmul.msk.f32.vlgmr.msra.gmra.mxu0 %vm304_vm0, %v271_v16 }
  0xd7   : > { %v373_v19 = vpop.f32.mrf.mxu0 }
  0xd8   : > { %v376_v20 = vmul.f32 0.17677669, %v373_v19 }
  0xda   : > { %v380_v21 = vsel %vm379_vm1, %v376_v20, -1e+30 }
  0xdb   : > { %381 = vmax.xlane.f32.xlu0 %v380_v21 }
 0x14e   : > { %v382_v28 = vpop.xlane.xlu0 %381 }
 0x14f   : > { %v383_v29 = vsub.f32 %v380_v21, %v382_v28 }
 0x151   : > { %v384_v30 = vmul.f32 1.442695, %v383_v29 }
 0x153   : > { %688 = vpow2.f32 %v384_v30 }
 0x159   : > { %v689_v31 = vpop.eup %688 }
 0x15a   : > { %386 = vadd.xlane.f32.xlu0 %v689_v31 }
 0x1cd   : > { %v387_v42 = vpop.xlane.xlu0 %386 }
 0x1ce   : > { %690 = vrcp.f32 %v387_v42  ;;  %v399_v46 = vand.u32 2147483648, %v387_v42  ;;  %v397_v48 = vand.u32 2147483647, %v387_v42  ;;  %vm393_vm3 = vweird.f32 %v387_v42 }
 0x1d0   : > { %v400_v50 = vor.u32 1.1754944e-38, %v399_v46  ;;  %vm398_vm5 = vcmp.eq.f32.partialorder %v397_v48, 8.507059e+37 }
 0x1d4   : > { %v691_v43 = vpop.eup %690 }
 0x1d5   : > { %v389_v44 = vmul.f32 %v691_v43, %v387_v42  ;;  %vm394_vm2 = vweird.f32 %v691_v43 }
 0x1d6   : > { %vm395_vm4 = vmor %vm393_vm3, %vm394_vm2 }
 0x1d7   : > { %v390_v45 = vsub.f32 1.0, %v389_v44 }
 0x1d9   : > { %v391_v47 = vmul.f32 %v691_v43, %v390_v45 }
 0x1db   : > { %v392_v49 = vadd.f32 %v691_v43, %v391_v47 }
 0x1dd   : > { %v396_v51 = vsel %vm395_vm4, %v691_v43, %v392_v49 }
 0x1de   : > { %v401_v52 = vsel %vm398_vm5, %v400_v50, %v396_v51 }
 0x1df   : > { %v402_v53 = vmul.f32 %v689_v31, %v401_v52 }
 0x1e1   : > { %419 = vmatmul.f32.vlgmr.msra.gmra.mxu1 %v402_v53  ;;  %424 = vst [vmem:[%s253_s5] sm:$0xff] %v402_v53 }
 0x1e2   : > { %719 = shalt.err (!%p716_p5)
}
 0x1e3   : > { %629 = dma.vmem_to_hbm [thread:$0]  (%p869_p4), %s460_s6, 128, %s462_s7, %s431_s8  }
 0x1e4   : > { %s442_s30 = scalar_lea.hbm %s1018_s3, %s622_s24  ;;  %s246_s5 = scalar_lea.vmem [#allocation2], %s596_s22 }
 0x1e5   : > { %s444_s10 = sshll.u32 %s246_s5, 4  ;;  %s446_s11 = sshll.u32 %s442_s30, 4  ;;  %s445_s10 = int_to_ptr.vmem [resolvable:$true] %s444_s10  ;;  %s447_s11 = int_to_ptr.hbm [resolvable:$true] %s446_s11 }
 0x1e6   : > { %s426_s9 = scalar_lea.sflag [#allocation3], %s957_s21  ;;  %s734_s18 = sshra.s32 %s447_s11, 4  ;;  %s735_s18 = int_to_ptr.hbm [resolvable:$true] %s734_s18 }
 0x1e7   : > { %s736_s12 = scalar_lea.hbm %s735_s18, 8  ;;  %s740_s24 = scalar_lea.hbm %s1018_s3, 16 }
 0x1e8   : > { %p737_p6 = scmp.ne.s32.totalorder %s735_s18, %s736_s12  ;;  %p741_p10 = scmp.lt.s32.totalorder %s735_s18, %s1018_s3 }
 0x1e9   : > { %p742_p11 = scmp.lt.s32.totalorder %s740_s24, %s736_s12 }
 0x1ea   : > { %p738_p7 = pnand %p737_p6, %p869_p4 }
 0x1eb   : > { %p743_p12 = por %p742_p11, %p741_p10 }
 0x1ec   : > { %p739_p9 = pneg %p738_p7 }
 0x1ee   : > { %p744_p13 = pnand %p743_p12, %p739_p9 }
 0x25e   : > { %v420_v54 = vpop.f32.mrf.mxu1 }
 0x25f   : > { %423 = vst [vmem:[%s246_s5] sm:$0xff] %v420_v54 }
 0x260   : > { %747 = shalt.err (!%p744_p13)
}
 0x261   : > { %628 = dma.vmem_to_hbm [thread:$0]  (%p869_p4), %s445_s10, 128, %s447_s11, %s426_s9  }
 0x262 PF: > { %p639_p0 = scmp.ge.s32.totalorder %s802_s20, 2  ;;  %s473_s21 = sand.u32 1, %s782_s15  }
 0x263   : > { %s474_s13 = scalar_lea.sflag [#allocation3], %s473_s21 }
 0x264   : > { %p633_p1 = pnand %p639_p0, %p876_p8 }
 0x266   : > { %p634_p2 = pneg %p633_p1 }
 0x268   : > { %773 = dma.done.wait (%p634_p2), %s474_s13, 128  }
 0x269   : > { %775 = vsyncadd (%p634_p2), %s474_s13, 4294967168  ;;  %s484_s14 = scalar_lea.sflag [#allocation5], %s473_s21 }
 0x26a   : > { %777 = dma.done.wait (%p634_p2), %s484_s14, 128  }
 0x26b   : > { %779 = vsyncadd (%p634_p2), %s484_s14, 4294967168  ;;  %s21_s20 = sadd.s32 1, %s802_s20   ;;  %s1022_s15 = smov %s786_s16 }
 0x26c   : > { %p18_p3 = scmp.ge.s32.totalorder %s21_s20, 4   ;;  %s1023_s16 = smov %s790_s17 }
 0x26d   : > { %s1024_s17 = smov %s882_s28  ;;  %s1025_s18 = smov %s798_s19 }
 0x26e   : > { %s1026_s19 = smov %s1028_s23  ;;  %20 = sbr.rel (!%p18_p3) target bundleno = 6 (0x6), region = 90 }
 0x273   :  { %490 = vsyncpa [#allocation3], 1 }
 0x274   :  { %492 = vsyncpa [#allocation3 + $0x1], 1 }
 0x275   :  { %493 = vsyncpa [#allocation5], 1 }
 0x276   :  { %495 = vsyncpa [#allocation5 + $0x1], 1 }

</bundles_post_ra>
